<compile_context>
chip_gen: v7x
topology: tpu7x:2x2x1
jax: 0.10.0
libtpu: 0.0.40
codegen_flags: <defaults>
</compile_context>

<pallas_src>
import functools

import jax
import jax.numpy as jnp
from jax import lax
from jax.experimental import pallas as pl
from jax.experimental.pallas import tpu as pltpu


def _round_up(n, m):
    return ((n + m - 1) // m) * m


def _relu_resnet_kernel(num_layers, L, F, P, x_ref, wb_ref, out_ref):
    """x_ref:  (tb, L) batch-major input tile (streams from HBM).
    wb_ref: (num_layers, F, P+1) packed params, VMEM-resident:
            wb[l, :out_l, :in_l] = W_l, wb[l, :out_l, P] = b_l, zeros elsewhere.
    out_ref: (1, tb) lane-dense output tile (batch on lanes)."""
    hi = lax.Precision.HIGHEST

    x = x_ref[...]                                       # (tb, L)

    # Layer 0: contract the last dims of W0 (F, L) and x (tb, L) -> (F, tb).
    # No host-side or in-kernel transpose of x is needed.
    slab = wb_ref[0]                                     # (F, P+1)
    h = lax.dot_general(slab[:, :L], x,
                        dimension_numbers=(((1,), (1,)), ((), ())),
                        precision=hi,
                        preferred_element_type=jnp.float32)       # (F, tb)
    h = jnp.maximum(h + slab[:, P:P + 1], 0.0)

    # Residual layers 1 .. num_layers-2: h = relu(Wi @ h + bi) + h.
    # Unrolled at trace time (num_mid is tiny).  If how_fat / num_mid grow
    # large, stream each (F, F) slab (layer grid axis or make_async_copy
    # prefetch) instead of keeping all of them resident -- v7x's 64 MiB VMEM
    # is what runs out first.
    for i in range(num_layers - 2):
        slab = wb_ref[1 + i]                             # (F, P+1)
        z = jnp.dot(slab[:, :F], h, precision=hi,
                    preferred_element_type=jnp.float32)
        h = jnp.maximum(z + slab[:, P:P + 1], 0.0) + h

    # Final layer: (1, F) @ (F, tb) + (1, 1) -> (1, tb).  torch.sum over the
    # width-1 feature axis is a no-op in this layout; the store is lane-dense.
    slab = wb_ref[num_layers - 1]
    y = jnp.dot(slab[0:1, :F], h, precision=hi,
                preferred_element_type=jnp.float32) + slab[0:1, P:P + 1]
    out_ref[...] = y.astype(out_ref.dtype)


def pack_params(w0, b0, wmid, bmid, wlast, blast):
    """One-time host-side packing of every weight/bias into a single slab.

    Layout: wb[l, :out_l, :in_l] = W_l, wb[l, :out_l, P] = b_l (P = max(L, F)),
    zeros elsewhere.  One operand -> one DMA descriptor per launch, and no
    dummy inputs when there are no residual layers.
    """
    F, L = w0.shape
    num_mid = wmid.shape[0]
    num_layers = num_mid + 2
    P = max(L, F)
    wb = jnp.zeros((num_layers, F, P + 1), jnp.float32)
    wb = wb.at[0, :, :L].set(w0)
    wb = wb.at[0, :, P].set(b0)
    if num_mid:
        wb = wb.at[1:1 + num_mid, :, :F].set(wmid)
        wb = wb.at[1:1 + num_mid, :, P].set(bmid)
    wb = wb.at[num_layers - 1, 0, :F].set(wlast[0])
    wb = wb.at[num_layers - 1, 0, P].set(blast[0])
    return wb


def relu_resnet_forward(x, wb, *, block_b=4096):
    """Fused ReLUResNetNormalized forward.

    x:  (B, L) float32, batch-major (NOT pre-transposed).
    wb: packed params from pack_params(): (num_layers, F, max(L, F)+1).
    returns (B,) float32.
    """
    B, L = x.shape
    num_layers, F, P1 = wb.shape
    P = P1 - 1

    # Batch tile: whole batch in one grid step on single-TensorCore parts
    # (fewer 0.35us steps, widest lane-dense store); on multi-TC parts split
    # into >= num_tc tiles of round_up(ceil(B/num_tc), 128) lanes so the
    # "parallel" batch axis keeps every core busy.
    try:
        kind = jax.devices()[0].device_kind.lower()
    except Exception:
        kind = ""
    num_tc = 2 if any(t in kind for t in ("v7", "v4", "v5p")) else 1
    tb = min(block_b, _round_up(pl.cdiv(B, num_tc), 128))
    if tb >= B:
        tb = B                       # single full-batch tile
    grid = (pl.cdiv(B, tb),)

    kernel = functools.partial(_relu_resnet_kernel, num_layers, L, F, P)
    out = pl.pallas_call(
        kernel,
        out_shape=jax.ShapeDtypeStruct((1, B), jnp.float32),
        grid=grid,
        in_specs=[
            # x streams in batch-major tiles; double-buffered by the pipeline.
            pl.BlockSpec((tb, L), lambda i: (i, 0)),
            # Packed params stay VMEM-resident across all grid steps.  At this
            # size default double-buffering is irrelevant; pass
            # pipeline_mode=pl.Buffered(1) here if how_fat grows and VMEM gets
            # tight (v7x's 64 MiB first).
            pl.BlockSpec((num_layers, F, P1), lambda i: (0, 0, 0)),
        ],
        # Lane-dense (1, tb) output: batch on lanes -> unmasked stores.
        out_specs=pl.BlockSpec((1, tb), lambda i: (0, i)),
        compiler_params=pltpu.CompilerParams(
            dimension_semantics=("parallel",)),
    )(x, wb)
    return out[0]                                        # (B,)


def reference_forward(x, w0, b0, wmid, bmid, wlast, blast):
    """Pure-JAX reference mirroring the PyTorch forward (batch-major layout)."""
    with jax.default_matmul_precision("highest"):
        h = jax.nn.relu(x @ w0.T + b0)
        for i in range(wmid.shape[0]):
            h = jax.nn.relu(h @ wmid[i].T + bmid[i]) + h
        y = h @ wlast.T + blast
        return jnp.sum(y, axis=1)


if __name__ == "__main__":
    # Small shapes consistent with the module's constructor.
    batch = 256
    input_length = 32
    how_fat = 16
    num_layers = 4          # -> 1 input layer, 2 residual layers, 1 output layer

    key = jax.random.PRNGKey(0)
    kx, k0, kb0, kmid, kbm, klast, kbl = jax.random.split(key, 7)

    scale = 0.1
    x = jax.random.normal(kx, (batch, input_length), dtype=jnp.float32)
    w0 = scale * jax.random.normal(k0, (how_fat, input_length), dtype=jnp.float32)
    b0 = scale * jax.random.normal(kb0, (how_fat,), dtype=jnp.float32)
    wmid = scale * jax.random.normal(
        kmid, (num_layers - 2, how_fat, how_fat), dtype=jnp.float32)
    bmid = scale * jax.random.normal(
        kbm, (num_layers - 2, how_fat), dtype=jnp.float32)
    wlast = scale * jax.random.normal(klast, (1, how_fat), dtype=jnp.float32)
    blast = scale * jax.random.normal(kbl, (1,), dtype=jnp.float32)

    wb = pack_params(w0, b0, wmid, bmid, wlast, blast)   # one-time packing
    out = relu_resnet_forward(x, wb)
    out = jax.block_until_ready(out)

    ref = reference_forward(x, w0, b0, wmid, bmid, wlast, blast)
    assert out.shape == (batch,)
    assert jnp.allclose(out, ref, atol=1e-3, rtol=1e-3), (out, ref)

    print("KERNEL_OK")
</pallas_src>

<mosaic_0001>
module attributes {stable_mosaic.version = 11 : i64} {
  func.func @_relu_resnet_kernel(%arg0: i32, %arg1: memref<256x32xf32, #tpu.memory_space<vmem>>, %arg2: memref<4x16x33xf32, #tpu.memory_space<vmem>>, %arg3: memref<1x256xf32, #tpu.memory_space<vmem>>) attributes {dimension_semantics = [#tpu.dimension_semantics<parallel>], iteration_bounds = array<i64: 1>, scalar_prefetch = 0 : i64, scratch_operands = 0 : i64, tpu.core_type = #tpu.core_type<tc>, window_params = [{transform_indices = @transform_0, window_bounds = array<i64: 256, 32>}, {pipeline_mode = #tpu.pipeline_mode<synchronous>, transform_indices = @transform_1, window_bounds = array<i64: 4, 16, 33>}, {transform_indices = @transform_2, window_bounds = array<i64: 1, 256>}]} {
    %c0 = arith.constant 0 : index
    %c0_0 = arith.constant 0 : index
    %0 = vector.load %arg1[%c0, %c0_0] : memref<256x32xf32, #tpu.memory_space<vmem>>, vector<256x32xf32>
    %c0_1 = arith.constant 0 : index
    %c0_2 = arith.constant 0 : index
    %c0_3 = arith.constant 0 : index
    %1 = vector.load %arg2[%c0_1, %c0_2, %c0_3] : memref<4x16x33xf32, #tpu.memory_space<vmem>>, vector<1x16x33xf32>
    %2 = vector.shape_cast %1 : vector<1x16x33xf32> to vector<16x33xf32>
    %3 = vector.extract_strided_slice %2 {offsets = [0, 0], sizes = [16, 32], strides = [1, 1]} : vector<16x33xf32> to vector<16x32xf32>
    %cst = arith.constant dense<0.000000e+00> : vector<16x256xf32>
    %4 = tpu.matmul %3, %0, %cst {dimension_numbers = #tpu.dot_dimension_numbers<[1], [1], [0], [0], [0, 0, 1, 0], [], []>, precision = #tpu.contract_precision<fp32>} : vector<16x32xf32>, vector<256x32xf32>, vector<16x256xf32> -> vector<16x256xf32>
    %5 = vector.extract_strided_slice %2 {offsets = [0, 32], sizes = [16, 1], strides = [1, 1]} : vector<16x33xf32> to vector<16x1xf32>
    %6 = vector.broadcast %5 : vector<16x1xf32> to vector<16x256xf32>
    %7 = arith.addf %4, %6 : vector<16x256xf32>
    %cst_4 = arith.constant 0.000000e+00 : f32
    %8 = vector.broadcast %cst_4 : f32 to vector<16x256xf32>
    %9 = arith.maximumf %7, %8 : vector<16x256xf32>
    %c1 = arith.constant 1 : index
    %c0_5 = arith.constant 0 : index
    %c0_6 = arith.constant 0 : index
    %10 = vector.load %arg2[%c1, %c0_5, %c0_6] : memref<4x16x33xf32, #tpu.memory_space<vmem>>, vector<1x16x33xf32>
    %11 = vector.shape_cast %10 : vector<1x16x33xf32> to vector<16x33xf32>
    %12 = vector.extract_strided_slice %11 {offsets = [0, 0], sizes = [16, 16], strides = [1, 1]} : vector<16x33xf32> to vector<16x16xf32>
    %cst_7 = arith.constant dense<0.000000e+00> : vector<16x256xf32>
    %13 = tpu.matmul %12, %9, %cst_7 {dimension_numbers = #tpu.dot_dimension_numbers<[1], [0], [0], [1], [0, 0, 1, 1], [], []>, precision = #tpu.contract_precision<fp32>} : vector<16x16xf32>, vector<16x256xf32>, vector<16x256xf32> -> vector<16x256xf32>
    %14 = vector.extract_strided_slice %11 {offsets = [0, 32], sizes = [16, 1], strides = [1, 1]} : vector<16x33xf32> to vector<16x1xf32>
    %15 = vector.broadcast %14 : vector<16x1xf32> to vector<16x256xf32>
    %16 = arith.addf %13, %15 : vector<16x256xf32>
    %cst_8 = arith.constant 0.000000e+00 : f32
    %17 = vector.broadcast %cst_8 : f32 to vector<16x256xf32>
    %18 = arith.maximumf %16, %17 : vector<16x256xf32>
    %19 = arith.addf %18, %9 : vector<16x256xf32>
    %c2 = arith.constant 2 : index
    %c0_9 = arith.constant 0 : index
    %c0_10 = arith.constant 0 : index
    %20 = vector.load %arg2[%c2, %c0_9, %c0_10] : memref<4x16x33xf32, #tpu.memory_space<vmem>>, vector<1x16x33xf32>
    %21 = vector.shape_cast %20 : vector<1x16x33xf32> to vector<16x33xf32>
    %22 = vector.extract_strided_slice %21 {offsets = [0, 0], sizes = [16, 16], strides = [1, 1]} : vector<16x33xf32> to vector<16x16xf32>
    %cst_11 = arith.constant dense<0.000000e+00> : vector<16x256xf32>
    %23 = tpu.matmul %22, %19, %cst_11 {dimension_numbers = #tpu.dot_dimension_numbers<[1], [0], [0], [1], [0, 0, 1, 1], [], []>, precision = #tpu.contract_precision<fp32>} : vector<16x16xf32>, vector<16x256xf32>, vector<16x256xf32> -> vector<16x256xf32>
    %24 = vector.extract_strided_slice %21 {offsets = [0, 32], sizes = [16, 1], strides = [1, 1]} : vector<16x33xf32> to vector<16x1xf32>
    %25 = vector.broadcast %24 : vector<16x1xf32> to vector<16x256xf32>
    %26 = arith.addf %23, %25 : vector<16x256xf32>
    %cst_12 = arith.constant 0.000000e+00 : f32
    %27 = vector.broadcast %cst_12 : f32 to vector<16x256xf32>
    %28 = arith.maximumf %26, %27 : vector<16x256xf32>
    %29 = arith.addf %28, %19 : vector<16x256xf32>
    %c3 = arith.constant 3 : index
    %c0_13 = arith.constant 0 : index
    %c0_14 = arith.constant 0 : index
    %30 = vector.load %arg2[%c3, %c0_13, %c0_14] : memref<4x16x33xf32, #tpu.memory_space<vmem>>, vector<1x16x33xf32>
    %31 = vector.shape_cast %30 : vector<1x16x33xf32> to vector<16x33xf32>
    %32 = vector.extract_strided_slice %31 {offsets = [0, 0], sizes = [1, 16], strides = [1, 1]} : vector<16x33xf32> to vector<1x16xf32>
    %cst_15 = arith.constant dense<0.000000e+00> : vector<1x256xf32>
    %33 = tpu.matmul %32, %29, %cst_15 {dimension_numbers = #tpu.dot_dimension_numbers<[1], [0], [0], [1], [0, 0, 1, 1], [], []>, precision = #tpu.contract_precision<fp32>} : vector<1x16xf32>, vector<16x256xf32>, vector<1x256xf32> -> vector<1x256xf32>
    %34 = vector.extract_strided_slice %31 {offsets = [0, 32], sizes = [1, 1], strides = [1, 1]} : vector<16x33xf32> to vector<1x1xf32>
    %35 = vector.broadcast %34 : vector<1x1xf32> to vector<1x256xf32>
    %36 = arith.addf %33, %35 : vector<1x256xf32>
    %c0_16 = arith.constant 0 : index
    %c0_17 = arith.constant 0 : index
    %37 = vector.load %arg3[%c0_16, %c0_17] : memref<1x256xf32, #tpu.memory_space<vmem>>, vector<1x256xf32>
    tpu.vector_store %arg3[%c0_16, %c0_17], %36 {strides = array<i32>} : memref<1x256xf32, #tpu.memory_space<vmem>>, vector<1x256xf32>,
    return
  }
  func.func @transform_0(%arg0: i32) -> (i32, i32) {
    %c0_i32 = arith.constant 0 : i32
    %c0_i32_0 = arith.constant 0 : i32
    return %arg0, %c0_i32 : i32, i32
  }
  func.func @transform_1(%arg0: i32) -> (i32, i32, i32) {
    %c0_i32 = arith.constant 0 : i32
    %c0_i32_0 = arith.constant 0 : i32
    %c0_i32_1 = arith.constant 0 : i32
    %c0_i32_2 = arith.constant 0 : i32
    return %c0_i32, %c0_i32_0, %c0_i32_1 : i32, i32, i32
  }
  func.func @transform_2(%arg0: i32) -> (i32, i32) {
    %c0_i32 = arith.constant 0 : i32
    %c0_i32_0 = arith.constant 0 : i32
    return %c0_i32, %arg0 : i32, i32
  }
}

</mosaic_0001>

<bundles_post_ra>
// kernel: tpu_custom_call.1
= control target key start
LH: loop header
LB: loop body
LE: loop exit
PB: predicated region body
PF: predicated region fallthrough
CT: control target
= control target key end

     0   :  { %vm56_vm0 = vcmask 261120   ;;  %s4301_s0 = inlined_call_operand.vmem [shape: f32[256,32], index: 0, kind: input, shape index: {}]   ;;  %s4302_s1 = inlined_call_operand.vmem [shape: f32[4,16,33], index: 1, kind: input, shape index: {}]   ;;  %s4303_s2 = inlined_call_operand.hbm [shape: f32[1,256], index: 2, kind: output, shape index: {}]  }
   0x1   :  { %v28_v0 = vld [vmem:[%s4301_s0 + $0x80] sm:$0xff]  ;;  %v29_v1 = vld [vmem:[%s4301_s0 + $0x88] sm:$0xff]  ;;  %v30_v7 = vld [vmem:[%s4301_s0 + $0x90] sm:$0xff] }
   0x2   :  { %v12_v2 = vld [vmem:[%s4301_s0] sm:$0xff]  ;;  %v3361_v3 = vsel %vm56_vm0, %v28_v0, 0  ;;  %v3364_v4 = vsel %vm56_vm0, %v29_v1, 0  ;;  %v13_v5 = vld [vmem:[%s4301_s0 + $0x8] sm:$0xff]  ;;  %v31_v8 = vld [vmem:[%s4301_s0 + $0x98] sm:$0xff]  ;;  %v3392_v16 = vsel %vm56_vm0, %v30_v7, 0 }
   0x3   :  { %v3370_v6 = vsel %vm56_vm0, %v12_v2, 0  ;;  %v4323_v9 = vand.u32 4294901760, %v3361_v3  ;;  %v4321_v10 = vand.u32 4294901760, %v3364_v4  ;;  %v3381_v11 = vsel %vm56_vm0, %v13_v5, 0  ;;  %v14_v13 = vld [vmem:[%s4301_s0 + $0x10] sm:$0xff]  ;;  %v15_v14 = vld [vmem:[%s4301_s0 + $0x18] sm:$0xff] }
   0x4   :  { %v4320_v12 = vand.u32 4294901760, %v3370_v6  ;;  %v4318_v15 = vand.u32 4294901760, %v3381_v11  ;;  %v3395_v17 = vsel %vm56_vm0, %v31_v8, 0  ;;  %v3398_v18 = vsel %vm56_vm0, %v14_v13, 0  ;;  %v32_v27 = vld [vmem:[%s4301_s0 + $0xa0] sm:$0xff]  ;;  %v33_v28 = vld [vmem:[%s4301_s0 + $0xa8] sm:$0xff] }
   0x5   :  { %v3403_v19 = vsub.f32 %v3361_v3, %v4323_v9  ;;  %v3408_v20 = vsub.f32 %v3364_v4, %v4321_v10  ;;  %v4317_v22 = vand.u32 4294901760, %v3392_v16  ;;  %v4315_v24 = vand.u32 4294901760, %v3395_v17  ;;  %v16_v29 = vld [vmem:[%s4301_s0 + $0x20] sm:$0xff]  ;;  %v17_v33 = vld [vmem:[%s4301_s0 + $0x28] sm:$0xff]  ;;  %v34_v37 = vld [vmem:[%s4301_s0 + $0xb0] sm:$0xff] }
   0x6   :  { %v3413_v21 = vsub.f32 %v3370_v6, %v4320_v12  ;;  %v3419_v23 = vsub.f32 %v3381_v11, %v4318_v15  ;;  %v3423_v25 = vsel %vm56_vm0, %v15_v14, 0  ;;  %v4314_v26 = vand.u32 4294901760, %v3398_v18  ;;  %v35_v42 = vld [vmem:[%s4301_s0 + $0xb8] sm:$0xff]  ;;  %v18_v47 = vld [vmem:[%s4301_s0 + $0x30] sm:$0xff]  ;;  %v36_v56 = vld [vmem:[%s4301_s0 + $0xc0] sm:$0xff] }
   0x7   :  { %v3018_v30 = vpack.c.bf16 %v3408_v20, %v3403_v19  ;;  %v3440_v31 = vsub.f32 %v3392_v16, %v4317_v22  ;;  %v4312_v32 = vand.u32 4294901760, %v3423_v25  ;;  %v3451_v35 = vsub.f32 %v3395_v17, %v4315_v24  ;;  %v19_v51 = vld [vmem:[%s4301_s0 + $0x38] sm:$0xff]  ;;  %v37_v59 = vld [vmem:[%s4301_s0 + $0xc8] sm:$0xff]  ;;  %v20_v60 = vld [vmem:[%s4301_s0 + $0x40] sm:$0xff] }
   0x8   :  { %v3020_v34 = vpack.c.bf16 %v3419_v23, %v3413_v21  ;;  %v3456_v36 = vsub.f32 %v3398_v18, %v4314_v26  ;;  %v3467_v39 = vsel %vm56_vm0, %v32_v27, 0  ;;  %v3470_v40 = vsel %vm56_vm0, %v33_v28, 0 }
   0x9   :  { %3019 = vmatprep.subr.bf16.mxu0 %v3018_v30  ;;  %v3464_v38 = vsub.f32 %v3423_v25, %v4312_v32  ;;  %v3473_v41 = vsel %vm56_vm0, %v16_v29, 0  ;;  %v3022_v43 = vpack.c.bf16 %v3451_v35, %v3440_v31  ;;  %v4310_v44 = vand.u32 4294901760, %v3467_v39 }
   0xa   :  { %3021 = vmatpush3.bf16.xpose.msra.mxu0 %v3020_v34  ;;  %v4309_v45 = vand.u32 4294901760, %v3470_v40  ;;  %v3483_v46 = vsel %vm56_vm0, %v17_v33, 0  ;;  %v4308_v48 = vand.u32 4294901760, %v3473_v41  ;;  %v3491_v50 = vsel %vm56_vm0, %v34_v37, 0 }
   0xb   :  { %v4307_v49 = vand.u32 4294901760, %v3483_v46  ;;  %3023 = vmatprep.subr.bf16.mxu0 %v3022_v43  ;;  %v3499_v52 = vsub.f32 %v3467_v39, %v4310_v44  ;;  %v3507_v54 = vsel %vm56_vm0, %v35_v42, 0  ;;  %v4306_v55 = vand.u32 4294901760, %v3491_v50 }
   0xc   :  { %v3504_v53 = vsub.f32 %v3470_v40, %v4309_v45  ;;  %v4304_v57 = vand.u32 4294901760, %v3507_v54  ;;  %v3515_v58 = vsel %vm56_vm0, %v18_v47, 0 }
   0xd   :  { %7 = vsyncpa [#allocation3], 0  ;;  %v3024_v61 = vpack.c.bf16 %v3464_v38, %v3456_v36  ;;  %v3528_v62 = vsub.f32 %v3473_v41, %v4308_v48  ;;  %v3531_v63 = vsel %vm56_vm0, %v19_v51, 0  ;;  %v21_v0 = vld [vmem:[%s4301_s0 + $0x48] sm:$0xff]  ;;  %v3541_v2 = vsub.f32 %v3483_v46, %v4307_v49  ;;  %v38_v8 = vld [vmem:[%s4301_s0 + $0xd0] sm:$0xff] }
   0xe   :  { %v3026_v1 = vpack.c.bf16 %v3504_v53, %v3499_v52  ;;  %v4305_v5 = vand.u32 4294901760, %v3515_v58  ;;  %v3545_v7 = vsel %vm56_vm0, %v36_v56, 0  ;;  %v3553_v13 = vsub.f32 %v3491_v50, %v4306_v55  ;;  %v39_v29 = vld [vmem:[%s4301_s0 + $0xd8] sm:$0xff]  ;;  %v22_v37 = vld [vmem:[%s4301_s0 + $0x50] sm:$0xff]  ;;  %v25_v45 = vld [vmem:[%s4301_s0 + $0x68] sm:$0xff] }
   0xf   :  { %v3558_v14 = vsub.f32 %v3507_v54, %v4304_v57  ;;  %v3561_v27 = vsel %vm56_vm0, %v37_v59, 0  ;;  %v3564_v28 = vsel %vm56_vm0, %v20_v60, 0  ;;  %v4311_v30 = vand.u32 4294901760, %v3531_v63  ;;  %v23_v56 = vld [vmem:[%s4301_s0 + $0x58] sm:$0xff] }
  0x10   :  { %v4313_v33 = vand.u32 4294901760, %v3545_v7  ;;  %v3572_v34 = vsel %vm56_vm0, %v21_v0, 0  ;;  %v4316_v47 = vand.u32 4294901760, %v3561_v27  ;;  %v3581_v51 = vsel %vm56_vm0, %v38_v8, 0  ;;  %v40_v8 = vld [vmem:[%s4301_s0 + $0xe0] sm:$0xff] }
  0x11   :  { %4346 = vst [vmem:[#allocation5_spill] sm:$0xff] %v3558_v14  ;;  %v3028_v59 = vpack.c.bf16 %v3541_v2, %v3528_v62  ;;  %v3591_v60 = vsub.f32 %v3515_v58, %v4305_v5  ;;  %v3595_v0 = vsel %vm56_vm0, %v39_v29, 0  ;;  %v4322_v43 = vand.u32 4294901760, %v3572_v34  ;;  %v41_v5 = vld [vmem:[%s4301_s0 + $0xe8] sm:$0xff]  ;;  %v24_v29 = vld [vmem:[%s4301_s0 + $0x60] sm:$0xff] }
  0x12   :  { %3025 = vmatpush3.bf16.xpose.msra.mxu0 %v3024_v61  ;;  %v4319_v61 = vand.u32 4294901760, %v3564_v28  ;;  %v4324_v42 = vand.u32 4294901760, %v3581_v51  ;;  %v3605_v57 = vsel %vm56_vm0, %v22_v37, 0  ;;  %v3616_v55 = vsub.f32 %v3531_v63, %v4311_v30 }
  0x13   :  { %3027 = vmatprep.subr.bf16.mxu0 %v3026_v1  ;;  %v3030_v1 = vpack.c.bf16 %v3558_v14, %v3553_v13  ;;  %4347 = vst [vmem:[#allocation6_spill] sm:$0xff] %v3605_v57  ;;  %v3621_v49 = vsub.f32 %v3545_v7, %v4313_v33  ;;  %v4325_v37 = vand.u32 4294901760, %v3595_v0  ;;  %v3625_v48 = vsel %vm56_vm0, %v23_v56, 0  ;;  %v42_v56 = vld [vmem:[%s4301_s0 + $0xf0] sm:$0xff] }
  0x14   :  { %4348 = vst [vmem:[#allocation7_spill] sm:$0xff] %v3625_v48  ;;  %v3633_v44 = vsub.f32 %v3561_v27, %v4316_v47  ;;  %v4326_v30 = vand.u32 4294901760, %v3605_v57  ;;  %v4328_v32 = vand.u32 4294901760, %v3625_v48  ;;  %v3638_v33 = vsel %vm56_vm0, %v40_v8, 0  ;;  %v43_v8 = vld [vmem:[%s4301_s0 + $0xf8] sm:$0xff] }
  0x15   :  { %4349 = vst [vmem:[#allocation8_spill] sm:$0xff] %v3638_v33  ;;  %v3646_v26 = vsub.f32 %v3564_v28, %v4319_v61  ;;  %v3649_v24 = vsel %vm56_vm0, %v41_v5, 0  ;;  %v4329_v47 = vand.u32 4294901760, %v3638_v33  ;;  %v3653_v22 = vsel %vm56_vm0, %v24_v29, 0  ;;  %v26_v29 = vld [vmem:[%s4301_s0 + $0x70] sm:$0xff] }
  0x16   :  { %4350 = vst [vmem:[#allocation9_spill] sm:$0xff] %v3649_v24  ;;  %4351 = vst [vmem:[#allocation10_spill] sm:$0xff] %v3653_v22  ;;  %v3661_v15 = vsub.f32 %v3572_v34, %v4322_v43  ;;  %v3666_v61 = vsub.f32 %v3581_v51, %v4324_v42  ;;  %v3670_v12 = vsel %vm56_vm0, %v25_v45, 0  ;;  %v3678_v10 = vsub.f32 %v3595_v0, %v4325_v37  ;;  %v27_v45 = vld [vmem:[%s4301_s0 + $0x78] sm:$0xff] }
  0x17   :  { %4352 = vst [vmem:[#allocation11_spill] sm:$0xff] %v3670_v12  ;;  %v3683_v42 = vsel %vm56_vm0, %v42_v56, 0  ;;  %v3691_v5 = vsub.f32 %v3605_v57, %v4326_v30  ;;  %v3696_v37 = vsub.f32 %v3625_v48, %v4328_v32  ;;  %v3699_v9 = vsel %vm56_vm0, %v43_v8, 0  ;;  %v3719_v8 = vld [vmem:[%s4302_s1] sm:$0xff] }
  0x18   :  { %4353 = vst [vmem:[#allocation12_spill] sm:$0xff] %v3683_v42  ;;  %4354 = vst [vmem:[#allocation13_spill] sm:$0xff] %v3699_v9  ;;  %v4355_v43 = vand.u32 4294901760, %v3649_v24  ;;  %v3714_v32 = vsel %vm56_vm0, %v26_v29, 0  ;;  %v4359_v56 = vand.u32 4294901760, %v3670_v12  ;;  %v3732_v57 = vsel %vm56_vm0, %v27_v45, 0 }
  0x19   :  { %4356 = vst [vmem:[#allocation14_spill] sm:$0xff] %v3714_v32  ;;  %4357 = vst [vmem:[#allocation15_spill] sm:$0xff] %v3719_v8  ;;  %v4362_v48 = vand.u32 4294901760, %v3699_v9  ;;  %v3032_v29 = vpack.c.bf16 %v3616_v55, %v3591_v60  ;;  %v4365_v14 = vand.u32 4294901760, %v3370_v6  ;;  %vm1078_vm1 = vcmask 130048  }
  0x1a   :  { %3029 = vmatpush3.bf16.xpose.msra.mxu0 %v3028_v59  ;;  %v3705_v59 = vsub.f32 %v3638_v33, %v4329_v47  ;;  %v3710_v30 = vsub.f32 %v3649_v24, %v4355_v43  ;;  %v3729_v43 = vsub.f32 %v3670_v12, %v4359_v56  ;;  %4360 = vst [vmem:[#allocation16_spill] sm:$0xff] %v3732_v57  ;;  %v4361_v24 = vand.u32 4294901760, %v3683_v42 }
  0x1b   :  { %3031 = vmatprep.subr.bf16.mxu0 %v3030_v1  ;;  %v4358_v1 = vand.u32 4294901760, %v3653_v22  ;;  %v4363_v56 = vand.u32 4294901760, %v3361_v3  ;;  %v4364_v12 = vand.u32 4294901760, %v3364_v4  ;;  %v4368_v3 = vand.u32 4294901760, %v3395_v17 }
  0x1c   :  { %v3738_v33 = vsub.f32 %v3683_v42, %v4361_v24  ;;  %v4366_v24 = vand.u32 4294901760, %v3381_v11  ;;  %v3034_v4 = vpack.c.bf16 %v3633_v44, %v3621_v49  ;;  %v4371_v11 = vand.u32 4294901760, %v3732_v57 }
  0x1d   :  { %v3724_v47 = vsub.f32 %v3653_v22, %v4358_v1  ;;  %v3743_v1 = vsub.f32 %v3699_v9, %v4362_v48  ;;  %v3750_v45 = vpack.c.bf16 %v4364_v12, %v4363_v56  ;;  %v57_v48 = vsel %vm56_vm0, %v3719_v8, 0 }
  0x1e   :  { %v3758_v42 = vpack.c.bf16 %v4366_v24, %v4365_v14  ;;  %v4367_v22 = vand.u32 4294901760, %v3392_v16  ;;  %v4370_v12 = vand.u32 4294901760, %v3714_v32  ;;  %v3778_v14 = vsub.f32 %v3732_v57, %v4371_v11 }
  0x1f   :  { %2955 = vmatprep.subr.bf16.mxu1 %v3750_v45  ;;  %v3781_v16 = vand.u32 4294901760, %v57_v48  ;;  %v3036_v17 = vpack.c.bf16 %v3661_v15, %v3646_v26  ;;  %v4373_v8 = vand.u32 4294901760, %v3398_v18  ;;  %v4374_v56 = vand.u32 4294901760, %v3423_v25 }
  0x20   :  { %v3766_v9 = vpack.c.bf16 %v4368_v3, %v4367_v22  ;;  %v3773_v6 = vsub.f32 %v3714_v32, %v4370_v12  ;;  %v3038_v22 = vpack.c.bf16 %v3678_v10, %v3666_v61  ;;  %2957 = vmatpush3.bf16.xpose.msra.mxu1 %v3758_v42  ;;  %v4375_v24 = vand.u32 4294901760, %v3467_v39 }
  0x21   :  { %4372 = vst [vmem:[#allocation18_spill] sm:$0xff] %v3781_v16  ;;  %v3797_v11 = vsub.f32 %v57_v48, %v3781_v16  ;;  %v3804_v57 = vpack.c.bf16 %v4374_v56, %v4373_v8  ;;  %v4376_v32 = vand.u32 4294901760, %v3470_v40  ;;  %v4377_v12 = vand.u32 4294901760, %v3473_v41 }
  0x22   :  { %4369 = vst [vmem:[#allocation17_spill] sm:$0xff] %v3766_v9  ;;  %2959 = vmatprep.subr.bf16.mxu1 %v3766_v9  ;;  %3033 = vmatpush3.bf16.xpose.msra.mxu0 %v3032_v29  ;;  %v4378_v48 = vand.u32 4294901760, %v3483_v46  ;;  %v4379_v9 = vand.u32 4294901760, %v3491_v50  ;;  %v4380_v18 = vand.u32 4294901760, %v3507_v54  ;;  %v4381_v8 = vand.u32 4294901760, %v3515_v58  ;;  %v3848_v58 = vld [vmem:[%s4302_s1 + $0x8] sm:$0xff] }
  0x23   :  { %v3810_v3 = vpack.c.bf16 %v4376_v32, %v4375_v24  ;;  %v4382_v39 = vand.u32 4294901760, %v3531_v63  ;;  %3035 = vmatprep.subr.bf16.mxu0 %v3034_v4  ;;  %2842 = vmatprep.mubr.f32.mxu0 %v3797_v11  ;;  %v4383_v40 = vand.u32 4294901760, %v3545_v7  ;;  %v4384_v41 = vand.u32 4294901760, %v3561_v27 }
  0x24   :  { %v3816_v16 = vpack.c.bf16 %v4378_v48, %v4377_v12  ;;  %v3822_v25 = vpack.c.bf16 %v4380_v18, %v4379_v9  ;;  %v4385_v9 = vand.u32 4294901760, %v3564_v28  ;;  %v4386_v50 = vand.u32 4294901760, %v3572_v34 }
  0x25   :  { %v3828_v29 = vpack.c.bf16 %v4382_v39, %v4381_v8  ;;  %v3837_v46 = vpack.c.bf16 %v4384_v41, %v4383_v40  ;;  %v3851_v63 = vand.u32 4294901760, %v3797_v11  ;;  %v4387_v7 = vand.u32 4294901760, %v3581_v51 }
  0x26   :  { %v3843_v54 = vpack.c.bf16 %v4386_v50, %v4385_v9  ;;  %v4388_v27 = vand.u32 4294901760, %v3595_v0  ;;  %v391_v28 = vand.u32 4294901760, %v3403_v19  ;;  %v398_v34 = vand.u32 4294901760, %v3408_v20 }
  0x27   :  { %v4389_v56 = vand.u32 4294901760, %v3413_v21  ;;  %v257_v12 = vsub.f32 %v3797_v11, %v3851_v63  ;;  %v4390_v48 = vand.u32 4294901760, %v3419_v23  ;;  %v405_v39 = vand.u32 4294901760, %v3440_v31 }
  0x28   :  { %v3857_v4 = vpack.c.bf16 %v4388_v27, %v4387_v7  ;;  %v3878_v40 = vsel %vm56_vm0, %v3848_v58, 0  ;;  %v392_v41 = vsub.f32 %v3403_v19, %v391_v28  ;;  %v399_v9 = vsub.f32 %v3408_v20, %v398_v34  ;;  %2961 = vmatpush3.bf16.xpose.msra.mxu1 %v3804_v57 }
  0x29   :  { %v280_v24 = vsub.f32 %v3413_v21, %v4389_v56  ;;  %v287_v18 = vsub.f32 %v3419_v23, %v4390_v48  ;;  %v4391_v51 = vmov %v4389_v56  ;;  %v4392_v0 = vmov %v4390_v48  ;;  %2963 = vmatprep.subr.bf16.mxu1 %v3810_v3 }
  0x2a   :  { %v3873_v8 = vpack.c.bf16 %v4392_v0, %v4391_v51  ;;  %v3882_v7 = vand.u32 4294901760, %v257_v12  ;;  %v3884_v56 = vpack.c.bf16 %v398_v34, %v391_v28  ;;  %v406_v21 = vsub.f32 %v3440_v31, %v405_v39  ;;  %3037 = vmatpush3.bf16.xpose.msra.mxu0 %v3036_v17 }
  0x2b   :  { %v281_v50 = vand.u32 4294901760, %v280_v24  ;;  %v288_v27 = vand.u32 4294901760, %v287_v18  ;;  %v393_v23 = vand.u32 4294901760, %v392_v41  ;;  %v400_v48 = vand.u32 4294901760, %v399_v9  ;;  %3039 = vmatprep.subr.bf16.mxu0 %v3038_v22 }
  0x2c   :  { %v412_v51 = vand.u32 4294901760, %v3451_v35  ;;  %v293_v0 = vand.u32 4294901760, %v3456_v36  ;;  %2770 = vmatprep.mubr.f32.mxu1 %v3882_v7  ;;  %v407_v20 = vand.u32 4294901760, %v406_v21  ;;  %v300_v28 = vand.u32 4294901760, %v3464_v38 }
  0x2d   :  { %v3892_v19 = vpack.c.bf16 %v288_v27, %v281_v50  ;;  %v419_v34 = vand.u32 4294901760, %v3499_v52  ;;  %v3896_v31 = vpack.c.bf16 %v400_v48, %v393_v23  ;;  %v426_v27 = vand.u32 4294901760, %v3504_v53 }
  0x2e   :  { %v413_v24 = vsub.f32 %v3451_v35, %v412_v51  ;;  %v294_v12 = vsub.f32 %v3456_v36, %v293_v0  ;;  %v3900_v18 = vpack.c.bf16 %v412_v51, %v405_v39  ;;  %v301_v41 = vsub.f32 %v3464_v38, %v300_v28 }
  0x2f   :  { %v3903_v9 = vpack.c.bf16 %v300_v28, %v293_v0  ;;  %v420_v50 = vsub.f32 %v3499_v52, %v419_v34  ;;  %v307_v17 = vand.u32 4294901760, %v3528_v62  ;;  %v314_v23 = vand.u32 4294901760, %v3541_v2 }
  0x30   :  { %v414_v21 = vand.u32 4294901760, %v413_v24  ;;  %v295_v32 = vand.u32 4294901760, %v294_v12  ;;  %v302_v35 = vand.u32 4294901760, %v301_v41  ;;  %v427_v36 = vsub.f32 %v3504_v53, %v426_v27  ;;  %v4393_v12 = vld [vmem:[#allocation5_spill] sm:$0xff]  ;;  %2965 = vmatpush3.bf16.xpose.msra.mxu1 %v3816_v16 }
  0x31   :  { %v421_v48 = vand.u32 4294901760, %v420_v50  ;;  %v3910_v39 = vpack.c.bf16 %v426_v27, %v419_v34  ;;  %v308_v38 = vsub.f32 %v3528_v62, %v307_v17  ;;  %v315_v52 = vsub.f32 %v3541_v2, %v314_v23  ;;  %2967 = vmatprep.subr.bf16.mxu1 %v3822_v25 }
  0x32   :  { %v3912_v22 = vpack.c.bf16 %v414_v21, %v407_v20  ;;  %v3916_v51 = vpack.c.bf16 %v314_v23, %v307_v17  ;;  %v3918_v0 = vpack.c.bf16 %v302_v35, %v295_v32  ;;  %v428_v28 = vand.u32 4294901760, %v427_v36 }
  0x33   :  { %v433_v24 = vand.u32 4294901760, %v3553_v13  ;;  %v440_v41 = vand.u32 4294901760, %v4393_v12  ;;  %v309_v53 = vand.u32 4294901760, %v308_v38  ;;  %v316_v34 = vand.u32 4294901760, %v315_v52 }
  0x34   :  { %v321_v20 = vand.u32 4294901760, %v3591_v60  ;;  %v328_v50 = vand.u32 4294901760, %v3616_v55  ;;  %v3926_v62 = vpack.c.bf16 %v428_v28, %v421_v48  ;;  %v4394_v21 = vpack.c.bf16 %v3696_v37, %v3691_v5 }
  0x35   :  { %v434_v2 = vsub.f32 %v3553_v13, %v433_v24  ;;  %v441_v32 = vsub.f32 %v4393_v12, %v440_v41  ;;  %v3930_v27 = vpack.c.bf16 %v440_v41, %v433_v24  ;;  %v3935_v17 = vpack.c.bf16 %v316_v34, %v309_v53 }
  0x36   :  { %3041 = vmatpush3.bf16.xpose.msra.mxu0 %v4394_v21  ;;  %v322_v23 = vsub.f32 %v3591_v60, %v321_v20  ;;  %v329_v35 = vsub.f32 %v3616_v55, %v328_v50  ;;  %v3939_v36 = vpack.c.bf16 %v328_v50, %v321_v20  ;;  %v4395_v48 = vpack.c.bf16 %v3710_v30, %v3705_v59 }
  0x37   :  { %v435_v13 = vand.u32 4294901760, %v434_v2  ;;  %v442_v38 = vand.u32 4294901760, %v441_v32  ;;  %v447_v52 = vand.u32 4294901760, %v3621_v49  ;;  %v454_v28 = vand.u32 4294901760, %v3633_v44 }
  0x38   :  { %3043 = vmatprep.subr.bf16.mxu0 %v4395_v48  ;;  %v323_v24 = vand.u32 4294901760, %v322_v23  ;;  %v330_v12 = vand.u32 4294901760, %v329_v35  ;;  %v335_v41 = vand.u32 4294901760, %v3646_v26  ;;  %v342_v60 = vand.u32 4294901760, %v3661_v15  ;;  %2969 = vmatpush3.bf16.xpose.msra.mxu1 %v3828_v29 }
  0x39   :  { %v3948_v53 = vpack.c.bf16 %v442_v38, %v435_v13  ;;  %v448_v55 = vsub.f32 %v3621_v49, %v447_v52  ;;  %v455_v34 = vsub.f32 %v3633_v44, %v454_v28  ;;  %v3952_v20 = vpack.c.bf16 %v454_v28, %v447_v52  ;;  %2971 = vmatprep.subr.bf16.mxu1 %v3837_v46 }
  0x3a   :  { %v3954_v50 = vpack.c.bf16 %v330_v12, %v323_v24  ;;  %v336_v2 = vsub.f32 %v3646_v26, %v335_v41  ;;  %v343_v32 = vsub.f32 %v3661_v15, %v342_v60  ;;  %v3958_v21 = vpack.c.bf16 %v342_v60, %v335_v41 }
  0x3b   :  { %v449_v23 = vand.u32 4294901760, %v448_v55  ;;  %v456_v35 = vand.u32 4294901760, %v455_v34  ;;  %v461_v48 = vand.u32 4294901760, %v3666_v61  ;;  %v468_v13 = vand.u32 4294901760, %v3678_v10 }
  0x3c   :  { %v337_v49 = vand.u32 4294901760, %v336_v2  ;;  %v344_v44 = vand.u32 4294901760, %v343_v32  ;;  %v349_v38 = vand.u32 4294901760, %v3691_v5  ;;  %v356_v52 = vand.u32 4294901760, %v3696_v37 }
  0x3d   :  { %v3966_v26 = vpack.c.bf16 %v456_v35, %v449_v23  ;;  %v462_v15 = vsub.f32 %v3666_v61, %v461_v48  ;;  %v469_v28 = vsub.f32 %v3678_v10, %v468_v13  ;;  %v3970_v24 = vpack.c.bf16 %v468_v13, %v461_v48 }
  0x3e   :  { %v4396_v12 = vpack.c.bf16 %v3729_v43, %v3724_v47  ;;  %v3975_v41 = vpack.c.bf16 %v344_v44, %v337_v49  ;;  %v350_v60 = vsub.f32 %v3691_v5, %v349_v38  ;;  %v357_v55 = vsub.f32 %v3696_v37, %v356_v52 }
  0x3f   :  { %v3979_v34 = vpack.c.bf16 %v356_v52, %v349_v38  ;;  %v4397_v2 = vpack.c.bf16 %v3743_v1, %v3738_v33  ;;  %v463_v61 = vand.u32 4294901760, %v462_v15  ;;  %v470_v10 = vand.u32 4294901760, %v469_v28 }
  0x40   :  { %3045 = vmatpush3.bf16.xpose.msra.mxu0 %v4396_v12  ;;  %v475_v32 = vand.u32 4294901760, %v3705_v59  ;;  %v482_v23 = vand.u32 4294901760, %v3710_v30  ;;  %v351_v35 = vand.u32 4294901760, %v350_v60  ;;  %v358_v48 = vand.u32 4294901760, %v357_v55  ;;  %2973 = vmatpush3.bf16.xpose.msra.mxu1 %v3843_v54 }
  0x41   :  { %3047 = vmatprep.subr.bf16.mxu0 %v4397_v2  ;;  %v363_v13 = vand.u32 4294901760, %v3724_v47  ;;  %v370_v5 = vand.u32 4294901760, %v3729_v43  ;;  %v3988_v49 = vpack.c.bf16 %v470_v10, %v463_v61  ;;  %v489_v2 = vand.u32 4294901760, %v3738_v33  ;;  %2975 = vmatprep.subr.bf16.mxu1 %v3857_v4 }
  0x42   :  { %v476_v37 = vsub.f32 %v3705_v59, %v475_v32  ;;  %v483_v44 = vsub.f32 %v3710_v30, %v482_v23  ;;  %v3992_v38 = vpack.c.bf16 %v482_v23, %v475_v32  ;;  %v3994_v52 = vpack.c.bf16 %v358_v48, %v351_v35 }
  0x43   :  { %v364_v15 = vsub.f32 %v3724_v47, %v363_v13  ;;  %v371_v28 = vsub.f32 %v3729_v43, %v370_v5  ;;  %v3998_v12 = vpack.c.bf16 %v370_v5, %v363_v13  ;;  %v496_v61 = vand.u32 4294901760, %v3743_v1 }
  0x44   :  { %4398 = vst [vmem:[#allocation5_spill] sm:$0xff] %v3992_v38  ;;  %v477_v60 = vand.u32 4294901760, %v476_v37  ;;  %v484_v55 = vand.u32 4294901760, %v483_v44  ;;  %v377_v10 = vand.u32 4294901760, %v3773_v6  ;;  %v384_v32 = vand.u32 4294901760, %v3778_v14 }
  0x45   :  { %4399 = vst [vmem:[#allocation19_spill] sm:$0xff] %v3998_v12  ;;  %v365_v59 = vand.u32 4294901760, %v364_v15  ;;  %v372_v30 = vand.u32 4294901760, %v371_v28  ;;  %v490_v43 = vsub.f32 %v3738_v33, %v489_v2  ;;  %v497_v23 = vsub.f32 %v3743_v1, %v496_v61  ;;  %v4402_v28 = vld [vmem:[#allocation6_spill] sm:$0xff]  ;;  %v4408_v12 = vld [vmem:[#allocation9_spill] sm:$0xff] }
  0x46   :  { %v4006_v47 = vpack.c.bf16 %v484_v55, %v477_v60  ;;  %v4010_v35 = vpack.c.bf16 %v496_v61, %v489_v2  ;;  %v4401_v48 = vpack.c.bf16 %v3778_v14, %v3773_v6  ;;  %v4016_v13 = vand.u32 4294901760, %v3878_v40  ;;  %v4404_v55 = vld [vmem:[#allocation7_spill] sm:$0xff] }
  0x47   :  { %v4018_v5 = vpack.c.bf16 %v372_v30, %v365_v59  ;;  %v378_v37 = vsub.f32 %v3773_v6, %v377_v10  ;;  %v385_v44 = vsub.f32 %v3778_v14, %v384_v32  ;;  %v491_v33 = vand.u32 4294901760, %v490_v43  ;;  %v4406_v59 = vld [vmem:[#allocation8_spill] sm:$0xff]  ;;  %v4410_v43 = vld [vmem:[#allocation17_spill] sm:$0xff] }
  0x48   :  { %4400 = vst [vmem:[#allocation20_spill] sm:$0xff] %v4010_v35  ;;  %3049 = vmatpush3.bf16.xpose.msra.mxu0 %v4401_v48  ;;  %v498_v15 = vand.u32 4294901760, %v497_v23  ;;  %v4023_v1 = vpack.c.bf16 %v384_v32, %v377_v10  ;;  %v4403_v60 = vand.u32 4294901760, %v4402_v28  ;;  %v4405_v2 = vand.u32 4294901760, %v4404_v55 }
  0x49   :  { %3051 = vmatprep.subr.bf16.mxu0 %v3750_v45  ;;  %v379_v48 = vand.u32 4294901760, %v378_v37  ;;  %v386_v35 = vand.u32 4294901760, %v385_v44  ;;  %v4407_v30 = vand.u32 4294901760, %v4406_v59  ;;  %v4409_v6 = vand.u32 4294901760, %v4408_v12  ;;  %v4411_v12 = vld [vmem:[#allocation10_spill] sm:$0xff]  ;;  %v4413_v37 = vld [vmem:[#allocation11_spill] sm:$0xff] }
  0x4a   :  { %v4029_v61 = vpack.c.bf16 %v4405_v2, %v4403_v60  ;;  %v4037_v14 = vpack.c.bf16 %v498_v15, %v491_v33  ;;  %v266_v10 = vsub.f32 %v3878_v40, %v4016_v13  ;;  %v4412_v23 = vand.u32 4294901760, %v4411_v12  ;;  %v4415_v40 = vld [vmem:[#allocation12_spill] sm:$0xff]  ;;  %v4417_v15 = vld [vmem:[#allocation13_spill] sm:$0xff] }
  0x4b   :  { %v4035_v38 = vpack.c.bf16 %v4409_v6, %v4407_v30  ;;  %v4041_v32 = vpack.c.bf16 %v386_v35, %v379_v48  ;;  %v4414_v44 = vand.u32 4294901760, %v4413_v37  ;;  %v4416_v35 = vand.u32 4294901760, %v4415_v40  ;;  %v4421_v2 = vld [vmem:[#allocation16_spill] sm:$0xff] }
  0x4c   :  { %2977 = vmatpush3.bf16.xpose.msra.mxu1 %v4029_v61  ;;  %v4418_v28 = vand.u32 4294901760, %v4417_v15  ;;  %v4422_v48 = vand.u32 4294901760, %v4421_v2  ;;  %v267_v30 = vand.u32 4294901760, %v266_v10 }
  0x4d   :  { %2979 = vmatprep.subr.bf16.mxu1 %v4035_v38  ;;  %v4052_v33 = vpack.c.bf16 %v4414_v44, %v4412_v23 }
  0x4e   :  { %v4058_v60 = vpack.c.bf16 %v4418_v28, %v4416_v35  ;;  %v268_v6 = vsub.f32 %v266_v10, %v267_v30 }
  0x4f   :  { %2843 = vmatmul.mubr.f32.vlgmr.msra.gmra.mrb[0].mxu0 %v3797_v11  ;;  %v4419_v11 = vld [vmem:[#allocation14_spill] sm:$0xff] }
  0x50   :  { %3053 = vmatpush3.bf16.xpose.msra.mxu0 %v3758_v42  ;;  %2844 = vmatprep.mubr.f32.mxu0 %v266_v10  ;;  %v4420_v55 = vand.u32 4294901760, %v4419_v11  ;;  %v269_v12 = vand.u32 4294901760, %v268_v6 }
  0x51   :  { %3055 = vmatprep.subr.bf16.mxu0 %v4410_v43 }
  0x52   :  { %v4069_v59 = vpack.c.bf16 %v4422_v48, %v4420_v55 }
  0x53   :  { %2845 = vmatmul.mubr.f32.gmra.mrb[2].mxu0 %v266_v10  ;;  %v4423_v10 = vld [vmem:[#allocation18_spill] sm:$0xff] }
  0x54   :  { %2878 = vmatprep.mubr.f32.mxu0 %v3851_v63  ;;  %2981 = vmatpush3.bf16.xpose.msra.mxu1 %v4052_v33 }
  0x55   :  { %2983 = vmatprep.subr.bf16.mxu1 %v4058_v60 }
  0x58   :  { %3057 = vmatpush3.bf16.xpose.msra.mxu0 %v3804_v57 }
  0x59   :  { %3059 = vmatprep.subr.bf16.mxu0 %v3810_v3 }
  0x5c   :  { %2985 = vmatpush3.bf16.xpose.msra.mxu1 %v4069_v59 }
  0x5d   :  { %2987 = vmatprep.subr.bf16.mxu1 %v3896_v31  ;;  %v4426_v31 = vld [vmem:[#allocation19_spill] sm:$0xff] }
  0x60   :  { %3061 = vmatpush3.bf16.xpose.msra.mxu0 %v3816_v16 }
  0x61   :  { %3063 = vmatprep.subr.bf16.mxu0 %v3822_v25 }
  0x63   :  { %2771 = vmatmul.mubr.f32.vlgmr.msra.gmra.mrb[0].mxu1 %v3882_v7  ;;  %v3332_v7 = vmov 32  }
  0x64   :  { %2989 = vmatpush3.bf16.xpose.msra.mxu1 %v3892_v19  ;;  %2772 = vmatprep.mubr.f32.mxu1 %v269_v12  ;;  %v4424_v19 = vld [vmem:[#allocation15_spill] sm:$0xff] }
  0x65   :  { %2991 = vmatprep.subr.bf16.mxu1 %v3912_v22  ;;  %3306 = vset.pattern.permute.xlu0 %v3332_v7 }
  0x66   :  { %48 = vperm.xlu0 %3306, %v4424_v19   ;;  %3307 = vset.pattern.permute.xlu1 %v3332_v7 }
  0x67   :  { %2773 = vmatmul.mubr.f32.gmra.mrb[2].mxu1 %v269_v12 }
  0x68   :  { %3065 = vmatpush3.bf16.xpose.msra.mxu0 %v3828_v29  ;;  %2806 = vmatprep.mubr.f32.mxu1 %v4423_v10 }
  0x69   :  { %3067 = vmatprep.subr.bf16.mxu0 %v3837_v46 }
  0x6a   :  { %53 = vperm.xlu0 %3306, %v3848_v58   ;;  %v4425_v58 = vld [vmem:[#allocation5_spill] sm:$0xff] }
  0x6c   :  { %2993 = vmatpush3.bf16.xpose.msra.mxu1 %v3918_v0 }
  0x6d   :  { %2995 = vmatprep.subr.bf16.mxu1 %v3926_v62 }
  0x70   :  { %3069 = vmatpush3.bf16.xpose.msra.mxu0 %v3843_v54 }
  0x71   :  { %3071 = vmatprep.subr.bf16.mxu0 %v3857_v4 }
  0x74   :  { %2997 = vmatpush3.bf16.xpose.msra.mxu1 %v3935_v17 }
  0x75   :  { %2999 = vmatprep.subr.bf16.mxu1 %v3948_v53 }
  0x78   :  { %3073 = vmatpush3.bf16.xpose.msra.mxu0 %v4029_v61 }
  0x79   :  { %3075 = vmatprep.subr.bf16.mxu0 %v4035_v38 }
  0x7c   :  { %3001 = vmatpush3.bf16.xpose.msra.mxu1 %v3954_v50 }
  0x7d   :  { %3003 = vmatprep.subr.bf16.mxu1 %v3966_v26 }
  0x80   :  { %3077 = vmatpush3.bf16.xpose.msra.mxu0 %v4052_v33 }
  0x81   :  { %3079 = vmatprep.subr.bf16.mxu0 %v4058_v60 }
  0x84   :  { %3005 = vmatpush3.bf16.xpose.msra.mxu1 %v3975_v41 }
  0x85   :  { %3007 = vmatprep.subr.bf16.mxu1 %v3988_v49 }
  0x88   :  { %3081 = vmatpush3.bf16.xpose.msra.mxu0 %v4069_v59 }
  0x89   :  { %3083 = vmatprep.subr.bf16.mxu0 %v3884_v56  ;;  %v2733_v56 = vld [vmem:[%s4302_s1 + $0x10] sm:$0xff] }
  0x8a   :  { %1070 = vperm.xlu1 %3307, %v2733_v56  }
  0x8c   :  { %3009 = vmatpush3.bf16.xpose.msra.mxu1 %v3994_v52 }
  0x8d   :  { %3011 = vmatprep.subr.bf16.mxu1 %v4006_v47 }
  0x8f   :  { %2879 = vmatmul.mubr.f32.vlgmr.msra.gmra.mrb[0].mxu0 %v3851_v63  ;;  %v4115_v63 = vld [vmem:[%s4302_s1 + $0x20] sm:$0xff] }
  0x90   :  { %3085 = vmatpush3.bf16.xpose.msra.mxu0 %v3873_v8  ;;  %2880 = vmatprep.mubr.f32.mxu0 %v267_v30  ;;  %v4122_v8 = vld [vmem:[%s4302_s1 + $0x30] sm:$0xff] }
  0x91   :  { %3087 = vmatprep.subr.bf16.mxu0 %v3900_v18  ;;  %1636 = vperm.xlu0 %3306, %v4115_v63   ;;  %v4427_v18 = vld [vmem:[#allocation20_spill] sm:$0xff] }
  0x93   :  { %2881 = vmatmul.mubr.f32.gmra.mrb[2].mxu0 %v267_v30 }
  0x94   :  { %2914 = vmatprep.mubr.f32.mxu0 %v4423_v10  ;;  %3013 = vmatpush3.bf16.xpose.msra.mxu1 %v4018_v5 }
  0x95   :  { %3015 = vmatprep.subr.bf16.mxu1 %v4037_v14  ;;  %2200 = vperm.xlu0 %3306, %v4122_v8  }
  0x98   :  { %3089 = vmatpush3.bf16.xpose.msra.mxu0 %v3903_v9 }
  0x99   :  { %3091 = vmatprep.subr.bf16.mxu0 %v3910_v39 }
  0x9c   :  { %3017 = vmatpush3.bf16.xpose.msra.mxu1 %v4041_v32 }
  0xa0   :  { %3093 = vmatpush3.bf16.xpose.msra.mxu0 %v3916_v51 }
  0xa1   :  { %3095 = vmatprep.subr.bf16.mxu0 %v3930_v27 }
  0xa3   :  { %2807 = vmatmul.mubr.f32.vlgmr.msra.gmra.mrb[0].mxu1 %v4423_v10 }
  0xa4   :  { %2808 = vmatprep.mubr.f32.mxu1 %v4016_v13 }
  0xa7   :  { %2809 = vmatmul.mubr.f32.gmra.mrb[2].mxu1 %v4016_v13 }
  0xa8   :  { %3097 = vmatpush3.bf16.xpose.msra.mxu0 %v3939_v36 }
  0xa9   :  { %3099 = vmatprep.subr.bf16.mxu0 %v3952_v20 }
  0xb0   :  { %3101 = vmatpush3.bf16.xpose.msra.mxu0 %v3958_v21 }
  0xb1   :  { %3103 = vmatprep.subr.bf16.mxu0 %v3970_v24 }
  0xb8   :  { %3105 = vmatpush3.bf16.xpose.msra.mxu0 %v3979_v34 }
  0xb9   :  { %3107 = vmatprep.subr.bf16.mxu0 %v4425_v58 }
  0xc0   :  { %3109 = vmatpush3.bf16.xpose.msra.mxu0 %v4426_v31 }
  0xc1   :  { %3111 = vmatprep.subr.bf16.mxu0 %v4427_v18 }
  0xc8   :  { %3113 = vmatpush3.bf16.xpose.msra.mxu0 %v4023_v1 }
  0xc9   :  { %3115 = vmatprep.subr.bf16.mxu0 %v3750_v45 }
  0xcf   :  { %2915 = vmatmul.mubr.f32.vlgmr.msra.gmra.mrb[0].mxu0 %v4423_v10 }
  0xd0   :  { %3117 = vmatpush3.bf16.xpose.msra.mxu0 %v3758_v42  ;;  %2916 = vmatprep.mubr.f32.mxu0 %v4016_v13  ;;  %v3333_v42 = vmov 0.0  }
  0xd1   :  { %3119 = vmatprep.subr.bf16.mxu0 %v4410_v43  ;;  %1151 = vmatprep.mubr.f32.mxu1 %v3333_v42 }
  0xd3   :  { %2917 = vmatmul.mubr.f32.gmra.mrb[2].mxu0 %v4016_v13 }
  0xd4   :  { %2950 = vmatprep.mubr.f32.mxu0 %v4423_v10 }
  0xd8   :  { %3121 = vmatpush3.bf16.xpose.msra.mxu0 %v3804_v57  ;;  %v2734_v57 = vld [vmem:[%s4302_s1 + $0x18] sm:$0xff] }
  0xd9   :  { %3123 = vmatprep.subr.bf16.mxu0 %v3810_v3  ;;  %1075 = vperm.xlu1 %3307, %v2734_v57   ;;  %v1081_v39 = vsel %vm1078_vm1, %v2734_v57, 0 }
  0xda   :  { %v4179_v53 = vand.u32 4294901760, %v1081_v39 }
  0xe0   :  { %3125 = vmatpush3.bf16.xpose.msra.mxu0 %v3816_v16 }
  0xe1   :  { %3127 = vmatprep.subr.bf16.mxu0 %v3822_v25 }
  0xe8   :  { %3129 = vmatpush3.bf16.xpose.msra.mxu0 %v3828_v29  ;;  %v4169_v29 = vld [vmem:[%s4302_s1 + $0x28] sm:$0xff]  ;;  %s3335_s1 = smov [#allocation2]  }
  0xe9   :  { %3131 = vmatprep.subr.bf16.mxu0 %v3837_v46  ;;  %1641 = vperm.xlu1 %3307, %v4169_v29   ;;  %v1079_v46 = vsel %vm1078_vm1, %v2733_v56, 0  ;;  %s2725_s30 = sshll.u32 %s3335_s1, 4  ;;  %s2726_s30 = int_to_ptr.vmem [resolvable:$true] %s2725_s30 }
  0xea   :  { %s3308_s3 = scalar_lea.vmem %s2726_s30, 32  ;;  %p3313_p1 = scmp.lt.s32.totalorder %s2726_s30, %s2726_s30 }
  0xeb   :  { %p3309_p0 = scmp.ne.s32.totalorder %s2726_s30, %s3308_s3  ;;  %p3314_p2 = scmp.lt.s32.totalorder %s3308_s3, %s3308_s3 }
  0xed   :  { %p3315_p3 = por %p3314_p2, %p3313_p1 }
  0xef   :  { %p3316_p4 = pnand %p3315_p3, %p3309_p0 }
  0xf0   :  { %3133 = vmatpush3.bf16.xpose.msra.mxu0 %v3843_v54  ;;  %v49_v54 = vpop.permute.xlu0 %48 }
  0xf1   :  { %3135 = vmatprep.subr.bf16.mxu0 %v3857_v4  ;;  %v4173_v4 = vand.u32 4294901760, %v1079_v46 }
  0xf3   :  { %v4177_v27 = vsub.f32 %v1079_v46, %v4173_v4 }
  0xf4   :  { %v54_v17 = vpop.permute.xlu0 %53 }
  0xf5   :  { %v1154_v47 = vand.u32 4294901760, %v4177_v27 }
  0xf7   :  { %v1155_v23 = vsub.f32 %v4177_v27, %v1154_v47 }
  0xf8   :  { %3137 = vmatpush3.bf16.xpose.msra.mxu0 %v4029_v61 }
  0xf9   :  { %3139 = vmatprep.subr.bf16.mxu0 %v4035_v38  ;;  %v1156_v11 = vand.u32 4294901760, %v1155_v23 }
 0x100   :  { %3141 = vmatpush3.bf16.xpose.msra.mxu0 %v4052_v33 }
 0x101   :  { %3143 = vmatprep.subr.bf16.mxu0 %v4058_v60 }
 0x108   :  { %3145 = vmatpush3.bf16.xpose.msra.mxu0 %v4069_v59 }
 0x10f   :  { %2951 = vmatmul.mubr.f32.vlgmr.msra.gmra.mrb[0].mxu0 %v4423_v10 }
 0x110   :  { %2952 = vmatprep.mubr.f32.mxu0 %v4016_v13 }
 0x113   :  { %2953 = vmatmul.mubr.f32.gmra.mrb[2].mxu0 %v4016_v13  ;;  %v1164_v13 = vsub.f32 %v1081_v39, %v4179_v53 }
 0x115   :  { %v1165_v37 = vand.u32 4294901760, %v1164_v13 }
 0x117   :  { %v1166_v55 = vsub.f32 %v1164_v13, %v1165_v37 }
 0x119   :  { %v1167_v10 = vand.u32 4294901760, %v1166_v55 }
 0x176   :  { %v503_v45 = vpop.f32.mrb[0].mxu1 }
 0x177   :  { %v505_v16 = vpop.f32.mrb[1].mxu1  ;;  %v3218_v9 = vadd.f32 %v503_v45, %v49_v54 }
 0x178   :  { %v3220_v22 = vadd.f32 %v505_v16, %v49_v54 }
 0x17a   :  { %v510_v3 = vpop.f32.mrb[2].mxu1 }
 0x17b   :  { %v512_v25 = vpop.f32.mrb[3].mxu1  ;;  %v3222_v20 = vadd.f32 %v510_v3, %v54_v17  ;;  %v1644_v3 = vsel %vm1078_vm1, %v4115_v63, 0 }
 0x17c   :  { %v3224_v21 = vadd.f32 %v512_v25, %v54_v17  ;;  %v1071_v25 = vpop.permute.xlu1 %1070  ;;  %v4221_v46 = vand.u32 4294901760, %v1644_v3 }
 0x1e2   :  { %v1049_v51 = vpop.f32.mrb[0].mxu0 }
 0x1e3   :  { %v3219_v0 = vadd.f32 %v3218_v9, %v1049_v51  ;;  %v1051_v62 = vpop.f32.mrb[1].mxu0  ;;  %v1646_v9 = vsel %vm1078_vm1, %v4169_v29, 0 }
 0x1e4   :  { %v3221_v36 = vadd.f32 %v3220_v22, %v1051_v62  ;;  %v4228_v62 = vand.u32 4294901760, %v1646_v9 }
 0x1e5   :  { %v4181_v50 = vmax.f32 %v3219_v0, 0.0  ;;  %v4226_v0 = vsub.f32 %v1644_v3, %v4221_v46 }
 0x1e6   :  { %v4183_v26 = vmax.f32 %v3221_v36, 0.0  ;;  %v1056_v24 = vpop.f32.mrb[2].mxu0 }
 0x1e7   :  { %v1085_v41 = vand.u32 4294901760, %v4181_v50  ;;  %v3223_v34 = vadd.f32 %v3222_v20, %v1056_v24  ;;  %v1058_v49 = vpop.f32.mrb[3].mxu0 }
 0x1e8   :  { %v1083_v38 = vand.u32 4294901760, %v4183_v26  ;;  %v3225_v52 = vadd.f32 %v3224_v21, %v1058_v49  ;;  %v1729_v49 = vsub.f32 %v1646_v9, %v4228_v62 }
 0x1e9   :  { %v1181_v5 = vsub.f32 %v4181_v50, %v1085_v41  ;;  %v4190_v1 = vmax.f32 %v3223_v34, 0.0  ;;  %v1719_v34 = vand.u32 4294901760, %v4226_v0 }
 0x1ea   :  { %v1175_v61 = vsub.f32 %v4183_v26, %v1083_v38  ;;  %v4193_v14 = vmax.f32 %v3225_v52, 0.0 }
 0x1eb   :  { %v1089_v32 = vand.u32 4294901760, %v4190_v1  ;;  %v1182_v33 = vand.u32 4294901760, %v1181_v5 }
 0x1ec   :  { %v1087_v43 = vand.u32 4294901760, %v4193_v14  ;;  %v1176_v44 = vand.u32 4294901760, %v1175_v61 }
 0x1ed   :  { %v1193_v40 = vsub.f32 %v4190_v1, %v1089_v32  ;;  %v3148_v60 = vpack.c.bf16 %v1089_v32, %v1085_v41  ;;  %v1183_v59 = vsub.f32 %v1181_v5, %v1182_v33 }
 0x1ee   :  { %v1187_v35 = vsub.f32 %v4193_v14, %v1087_v43  ;;  %v3146_v15 = vpack.c.bf16 %v1087_v43, %v1083_v38  ;;  %v1177_v2 = vsub.f32 %v1175_v61, %v1176_v44  ;;  %v1730_v43 = vand.u32 4294901760, %v1729_v49 }
 0x1ef   :  { %v1194_v28 = vand.u32 4294901760, %v1193_v40  ;;  %v1184_v56 = vand.u32 4294901760, %v1183_v59  ;;  %v3156_v57 = vpack.c.bf16 %v1193_v40, %v1181_v5 }
 0x1f0   :  { %3147 = vmatprep.subr.bf16.mxu1 %v3146_v15  ;;  %v1188_v48 = vand.u32 4294901760, %v1187_v35  ;;  %v1178_v7 = vand.u32 4294901760, %v1177_v2  ;;  %v3154_v18 = vpack.c.bf16 %v1187_v35, %v1175_v61  ;;  %v1720_v61 = vsub.f32 %v4226_v0, %v1719_v34 }
 0x1f1   :  { %3149 = vmatpush1.bf16.msra.mxu1 %v3148_v60  ;;  %v1195_v30 = vsub.f32 %v1193_v40, %v1194_v28  ;;  %v3164_v16 = vpack.c.bf16 %v1194_v28, %v1182_v33 }
 0x1f2   :  { %v1189_v6 = vsub.f32 %v1187_v35, %v1188_v48  ;;  %v3162_v45 = vpack.c.bf16 %v1188_v48, %v1176_v44 }
 0x1f3   :  { %v1196_v12 = vand.u32 4294901760, %v1195_v30 }
 0x1f4   :  { %1157 = vmatmul.mubr.f32.vlgmr.msra.gmra.mrb[4].mxu1 %v1156_v11  ;;  %v1190_v19 = vand.u32 4294901760, %v1189_v6 }
 0x1f5   :  { %1162 = vmatprep.mubr.f32.mxu1 %v3333_v42  ;;  %v3152_v31 = vpack.c.bf16 %v1196_v12, %v1184_v56 }
 0x1f6   :  { %v3150_v58 = vpack.c.bf16 %v1190_v19, %v1178_v7 }
 0x1f8   :  { %1168 = vmatmul.mubr.f32.gmra.mrb[6].mxu1 %v1167_v10  ;;  %3151 = vmatprep.subr.bf16.mxu1 %v3150_v58 }
 0x1f9   :  { %3153 = vmatpush1.bf16.msra.mxu1 %v3152_v31  ;;  %1258 = vmatprep.mubr.f32.mxu1 %v3333_v42 }
 0x1fa   :  { %3155 = vmatprep.subr.bf16.mxu1 %v3154_v18  ;;  %v2203_v18 = vsel %vm1078_vm1, %v4122_v8, 0 }
 0x1fc   :  { %1260 = vmatmul.mubr.f32.vlgmr.msra.gmra.mrb[4].mxu1 %v4173_v4 }
 0x1fd   :  { %3157 = vmatpush1.bf16.msra.mxu1 %v3156_v57  ;;  %1265 = vmatprep.mubr.f32.mxu1 %v3333_v42  ;;  %v4274_v57 = vand.u32 4294901760, %v2203_v18 }
 0x1fe   :  { %3159 = vmatprep.subr.bf16.mxu1 %v3146_v15 }
 0x200   :  { %1267 = vmatmul.mubr.f32.gmra.mrb[6].mxu1 %v4179_v53 }
 0x201   :  { %1345 = vmatprep.mubr.f32.mxu1 %v3333_v42 }
 0x204   :  { %1348 = vmatmul.mubr.f32.vlgmr.msra.gmra.mrb[4].mxu1 %v4177_v27  ;;  %v1076_v27 = vpop.permute.xlu1 %1075 }
 0x205   :  { %3161 = vmatpush1.bf16.msra.mxu1 %v3148_v60  ;;  %1353 = vmatprep.mubr.f32.mxu1 %v3333_v42 }
 0x206   :  { %3163 = vmatprep.subr.bf16.mxu1 %v3162_v45  ;;  %v1637_v45 = vpop.permute.xlu0 %1636 }
 0x208   :  { %1356 = vmatmul.mubr.f32.gmra.mrb[6].mxu1 %v1164_v13 }
 0x209   :  { %1430 = vmatprep.mubr.f32.mxu1 %v3333_v42 }
 0x20c   :  { %1434 = vmatmul.mubr.f32.vlgmr.msra.gmra.mrb[4].mxu1 %v1154_v47 }
 0x20d   :  { %3165 = vmatpush1.bf16.msra.mxu1 %v3164_v16  ;;  %1439 = vmatprep.mubr.f32.mxu1 %v3333_v42 }
 0x20e   :  { %3167 = vmatprep.subr.bf16.mxu1 %v3146_v15  ;;  %v1731_v15 = vsub.f32 %v1729_v49, %v1730_v43 }
 0x210   :  { %1443 = vmatmul.mubr.f32.gmra.mrb[6].mxu1 %v1165_v37  ;;  %v1732_v59 = vand.u32 4294901760, %v1731_v15 }
 0x211   :  { %1525 = vmatprep.mubr.f32.mxu1 %v3333_v42 }
 0x214   :  { %1527 = vmatmul.mubr.f32.vlgmr.msra.gmra.mrb[4].mxu1 %v4173_v4 }
 0x215   :  { %3169 = vmatpush1.bf16.msra.mxu1 %v3148_v60  ;;  %1532 = vmatprep.mubr.f32.mxu1 %v3333_v42 }
 0x218   :  { %1534 = vmatmul.mubr.f32.gmra.mrb[6].mxu1 %v4179_v53 }
 0x219   :  { %1608 = vmatprep.mubr.f32.mxu1 %v3333_v42 }
 0x21c   :  { %1610 = vmatmul.mubr.f32.vlgmr.msra.gmra.mrb[4].mxu1 %v4173_v4 }
 0x21d   :  { %1615 = vmatprep.mubr.f32.mxu1 %v3333_v42 }
 0x220   :  { %1617 = vmatmul.mubr.f32.gmra.mrb[6].mxu1 %v4179_v53 }
 0x221   :  { %1716 = vmatprep.mubr.f32.mxu1 %v3333_v42 }
 0x2ef   :  { %v1611_v54 = vpop.f32.mrb[4].mxu1 }
 0x2f0   :  { %v3226_v39 = vadd.f32 %v1611_v54, %v1071_v25  ;;  %v1613_v22 = vpop.f32.mrb[5].mxu1 }
 0x2f1   :  { %v3227_v51 = vadd.f32 %v1613_v22, %v1071_v25 }
 0x2f2   :  { %v1623_v4 = vmax.f32 %v3226_v39, 0.0  ;;  %v2275_v39 = vsub.f32 %v2203_v18, %v4274_v57 }
 0x2f3   :  { %v1624_v17 = vmax.f32 %v3227_v51, 0.0  ;;  %v1618_v36 = vpop.f32.mrb[6].mxu1 }
 0x2f4   :  { %v4231_v63 = vadd.f32 %v1623_v4, %v4181_v50  ;;  %v3228_v53 = vadd.f32 %v1618_v36, %v1076_v27  ;;  %v1620_v20 = vpop.f32.mrb[7].mxu1 }
 0x2f5   :  { %v4234_v21 = vadd.f32 %v1624_v17, %v4183_v26  ;;  %v3229_v29 = vadd.f32 %v1620_v20, %v1076_v27 }
 0x2f6   :  { %v1650_v24 = vand.u32 4294901760, %v4231_v63  ;;  %v1625_v41 = vmax.f32 %v3228_v53, 0.0  ;;  %v2276_v53 = vand.u32 4294901760, %v2275_v39 }
 0x2f7   :  { %v1626_v38 = vmax.f32 %v3229_v29, 0.0  ;;  %v1648_v52 = vand.u32 4294901760, %v4234_v21 }
 0x2f8   :  { %v1746_v47 = vsub.f32 %v4231_v63, %v1650_v24  ;;  %v4242_v50 = vadd.f32 %v1625_v41, %v4190_v1 }
 0x2f9   :  { %v4245_v13 = vadd.f32 %v1626_v38, %v4193_v14  ;;  %v1740_v26 = vsub.f32 %v4234_v21, %v1648_v52  ;;  %v1721_v14 = vand.u32 4294901760, %v1720_v61 }
 0x2fa   :  { %v1654_v5 = vand.u32 4294901760, %v4242_v50  ;;  %v1747_v44 = vand.u32 4294901760, %v1746_v47 }
 0x2fb   :  { %v1652_v32 = vand.u32 4294901760, %v4245_v13  ;;  %v1741_v23 = vand.u32 4294901760, %v1740_v26 }
 0x2fc   :  { %v1758_v37 = vsub.f32 %v4242_v50, %v1654_v5  ;;  %v3172_v40 = vpack.c.bf16 %v1654_v5, %v1650_v24  ;;  %v1748_v11 = vsub.f32 %v1746_v47, %v1747_v44 }
 0x2fd   :  { %v3170_v33 = vpack.c.bf16 %v1652_v32, %v1648_v52  ;;  %v1752_v1 = vsub.f32 %v4245_v13, %v1652_v32  ;;  %v1742_v28 = vsub.f32 %v1740_v26, %v1741_v23 }
 0x2fe   :  { %v1759_v35 = vand.u32 4294901760, %v1758_v37  ;;  %v1749_v12 = vand.u32 4294901760, %v1748_v11  ;;  %v3180_v56 = vpack.c.bf16 %v1758_v37, %v1746_v47  ;;  %v2277_v47 = vsub.f32 %v2275_v39, %v2276_v53 }
 0x2ff   :  { %3171 = vmatprep.subr.bf16.mxu1 %v3170_v33  ;;  %v1753_v60 = vand.u32 4294901760, %v1752_v1  ;;  %v1743_v30 = vand.u32 4294901760, %v1742_v28  ;;  %v3178_v19 = vpack.c.bf16 %v1752_v1, %v1740_v26 }
 0x300   :  { %3173 = vmatpush1.bf16.msra.mxu1 %v3172_v40  ;;  %v1760_v55 = vsub.f32 %v1758_v37, %v1759_v35  ;;  %v3188_v31 = vpack.c.bf16 %v1759_v35, %v1747_v44  ;;  %v2278_v44 = vand.u32 4294901760, %v2277_v47 }
 0x301   :  { %v1754_v2 = vsub.f32 %v1752_v1, %v1753_v60  ;;  %v3186_v58 = vpack.c.bf16 %v1753_v60, %v1741_v23 }
 0x302   :  { %v1761_v48 = vand.u32 4294901760, %v1760_v55 }
 0x303   :  { %1722 = vmatmul.mubr.f32.vlgmr.msra.gmra.mrb[8].mxu1 %v1721_v14  ;;  %v1755_v6 = vand.u32 4294901760, %v1754_v2 }
 0x304   :  { %1727 = vmatprep.mubr.f32.mxu1 %v3333_v42  ;;  %v3176_v7 = vpack.c.bf16 %v1761_v48, %v1749_v12  ;;  %v3334_v48 = vmov 1966171168  }
 0x305   :  { %v3174_v10 = vpack.c.bf16 %v1755_v6, %v1743_v30  ;;  %v2702_v30 = vlaneseq }
 0x307   :  { %1733 = vmatmul.mubr.f32.gmra.mrb[10].mxu1 %v1732_v59  ;;  %3175 = vmatprep.subr.bf16.mxu1 %v3174_v10  ;;  %v2700_v59 = vunpack.c.l.s4 %v3334_v48  ;;  %v2703_v12 = vshrl.u32 %v2702_v30, 7  ;;  %v2201_v10 = vpop.permute.xlu0 %2200  ;;  %vm2716_vm2 = vcmp.lt.s32.totalorder %v2702_v30, 256 }
 0x308   :  { %3177 = vmatpush1.bf16.msra.mxu1 %v3176_v7  ;;  %1823 = vmatprep.mubr.f32.mxu1 %v3333_v42 }
 0x309   :  { %3179 = vmatprep.subr.bf16.mxu1 %v3178_v19  ;;  %v2701_v6 = vunpack.c.0.s8 %v2700_v59 }
 0x30b   :  { %1825 = vmatmul.mubr.f32.vlgmr.msra.gmra.mrb[8].mxu1 %v4221_v46 }
 0x30c   :  { %3181 = vmatpush1.bf16.msra.mxu1 %v3180_v56  ;;  %1830 = vmatprep.mubr.f32.mxu1 %v3333_v42 }
 0x30d   :  { %3183 = vmatprep.subr.bf16.mxu1 %v3170_v33 }
 0x30f   :  { %1832 = vmatmul.mubr.f32.gmra.mrb[10].mxu1 %v4228_v62 }
 0x310   :  { %1910 = vmatprep.mubr.f32.mxu1 %v3333_v42 }
 0x313   :  { %1913 = vmatmul.mubr.f32.vlgmr.msra.gmra.mrb[8].mxu1 %v4226_v0 }
 0x314   :  { %3185 = vmatpush1.bf16.msra.mxu1 %v3172_v40  ;;  %1918 = vmatprep.mubr.f32.mxu1 %v3333_v42 }
 0x315   :  { %3187 = vmatprep.subr.bf16.mxu1 %v3186_v58 }
 0x317   :  { %1921 = vmatmul.mubr.f32.gmra.mrb[10].mxu1 %v1729_v49 }
 0x318   :  { %1995 = vmatprep.mubr.f32.mxu1 %v3333_v42 }
 0x31b   :  { %1999 = vmatmul.mubr.f32.vlgmr.msra.gmra.mrb[8].mxu1 %v1719_v34 }
 0x31c   :  { %3189 = vmatpush1.bf16.msra.mxu1 %v3188_v31  ;;  %2004 = vmatprep.mubr.f32.mxu1 %v3333_v42  ;;  %v2704_v31 = vsub.s32 %v2701_v6, %v2703_v12 }
 0x31d   :  { %3191 = vmatprep.subr.bf16.mxu1 %v3170_v33 }
 0x31f   :  { %2008 = vmatmul.mubr.f32.gmra.mrb[10].mxu1 %v1730_v43 }
 0x320   :  { %2090 = vmatprep.mubr.f32.mxu1 %v3333_v42 }
 0x323   :  { %2092 = vmatmul.mubr.f32.vlgmr.msra.gmra.mrb[8].mxu1 %v4221_v46 }
 0x324   :  { %3193 = vmatpush1.bf16.msra.mxu1 %v3172_v40  ;;  %2097 = vmatprep.mubr.f32.mxu1 %v3333_v42 }
 0x327   :  { %2099 = vmatmul.mubr.f32.gmra.mrb[10].mxu1 %v4228_v62 }
 0x328   :  { %2173 = vmatprep.mubr.f32.mxu1 %v3333_v42 }
 0x32b   :  { %2175 = vmatmul.mubr.f32.vlgmr.msra.gmra.mrb[8].mxu1 %v4221_v46  ;;  %v1642_v46 = vpop.permute.xlu1 %1641 }
 0x32c   :  { %2180 = vmatprep.mubr.f32.mxu1 %v3333_v42 }
 0x32f   :  { %2182 = vmatmul.mubr.f32.gmra.mrb[10].mxu1 %v4228_v62 }
 0x330   :  { %2273 = vmatprep.mubr.f32.mxu1 %v3333_v42 }
 0x3fe   :  { %v2176_v16 = vpop.f32.mrb[8].mxu1 }
 0x3ff   :  { %v3230_v3 = vadd.f32 %v2176_v16, %v1637_v45  ;;  %v2178_v25 = vpop.f32.mrb[9].mxu1 }
 0x400   :  { %v3231_v54 = vadd.f32 %v2178_v25, %v1637_v45 }
 0x401   :  { %v2188_v9 = vmax.f32 %v3230_v3, 0.0 }
 0x402   :  { %v2189_v22 = vmax.f32 %v3231_v54, 0.0  ;;  %v2183_v51 = vpop.f32.mrb[10].mxu1 }
 0x403   :  { %v2192_v4 = vadd.f32 %v2188_v9, %v4231_v63  ;;  %v3232_v0 = vadd.f32 %v2183_v51, %v1642_v46  ;;  %v2185_v62 = vpop.f32.mrb[11].mxu1 }
 0x404   :  { %v2193_v27 = vadd.f32 %v2189_v22, %v4234_v21  ;;  %v3233_v8 = vadd.f32 %v2185_v62, %v1642_v46 }
 0x405   :  { %v2207_v17 = vand.u32 4294901760, %v2192_v4  ;;  %v2190_v36 = vmax.f32 %v3232_v0, 0.0 }
 0x406   :  { %v2205_v20 = vand.u32 4294901760, %v2193_v27  ;;  %v2191_v29 = vmax.f32 %v3233_v8, 0.0 }
 0x407   :  { %v2292_v24 = vsub.f32 %v2192_v4, %v2207_v17  ;;  %v2194_v41 = vadd.f32 %v2190_v36, %v4242_v50 }
 0x408   :  { %v2286_v34 = vsub.f32 %v2193_v27, %v2205_v20  ;;  %v2195_v49 = vadd.f32 %v2191_v29, %v4245_v13 }
 0x409   :  { %v2293_v38 = vand.u32 4294901760, %v2292_v24  ;;  %v2211_v52 = vand.u32 4294901760, %v2194_v41 }
 0x40a   :  { %v2209_v63 = vand.u32 4294901760, %v2195_v49  ;;  %v2287_v26 = vand.u32 4294901760, %v2286_v34 }
 0x40b   :  { %v3196_v5 = vpack.c.bf16 %v2211_v52, %v2207_v17  ;;  %v2304_v61 = vsub.f32 %v2194_v41, %v2211_v52  ;;  %v2294_v43 = vsub.f32 %v2292_v24, %v2293_v38 }
 0x40c   :  { %v2298_v21 = vsub.f32 %v2195_v49, %v2209_v63  ;;  %v3194_v32 = vpack.c.bf16 %v2209_v63, %v2205_v20  ;;  %v2288_v33 = vsub.f32 %v2286_v34, %v2287_v26 }
 0x40d   :  { %v2305_v23 = vand.u32 4294901760, %v2304_v61  ;;  %v3204_v37 = vpack.c.bf16 %v2304_v61, %v2292_v24  ;;  %v2295_v15 = vand.u32 4294901760, %v2294_v43 }
 0x40e   :  { %3195 = vmatprep.subr.bf16.mxu1 %v3194_v32  ;;  %v2299_v1 = vand.u32 4294901760, %v2298_v21  ;;  %v3202_v50 = vpack.c.bf16 %v2298_v21, %v2286_v34  ;;  %v2289_v60 = vand.u32 4294901760, %v2288_v33 }
 0x40f   :  { %v2306_v40 = vsub.f32 %v2304_v61, %v2305_v23  ;;  %3197 = vmatpush1.bf16.msra.mxu1 %v3196_v5  ;;  %v3212_v13 = vpack.c.bf16 %v2305_v23, %v2293_v38 }
 0x410   :  { %v2300_v35 = vsub.f32 %v2298_v21, %v2299_v1  ;;  %v3210_v14 = vpack.c.bf16 %v2299_v1, %v2287_v26 }
 0x411   :  { %v2307_v28 = vand.u32 4294901760, %v2306_v40 }
 0x412   :  { %2279 = vmatmul.mubr.f32.vlgmr.msra.gmra.mrb[12].mxu1 %v2278_v44  ;;  %v2301_v11 = vand.u32 4294901760, %v2300_v35 }
 0x413   :  { %v3200_v55 = vpack.c.bf16 %v2307_v28, %v2295_v15  ;;  %2369 = vmatprep.mubr.f32.mxu1 %v3333_v42 }
 0x414   :  { %v3198_v2 = vpack.c.bf16 %v2301_v11, %v2289_v60 }
 0x416   :  { %3199 = vmatprep.subr.bf16.mxu1 %v3198_v2 }
 0x417   :  { %3201 = vmatpush1.bf16.msra.mxu1 %v3200_v55 }
 0x418   :  { %3203 = vmatprep.subr.bf16.mxu1 %v3202_v50 }
 0x41a   :  { %2371 = vmatmul.mubr.f32.vlgmr.msra.gmra.mrb[12].mxu1 %v4274_v57 }
 0x41b   :  { %3205 = vmatpush1.bf16.msra.mxu1 %v3204_v37  ;;  %2449 = vmatprep.mubr.f32.mxu1 %v3333_v42 }
 0x41c   :  { %3207 = vmatprep.subr.bf16.mxu1 %v3194_v32 }
 0x422   :  { %2452 = vmatmul.mubr.f32.vlgmr.msra.gmra.mrb[12].mxu1 %v2275_v39 }
 0x423   :  { %3209 = vmatpush1.bf16.msra.mxu1 %v3196_v5  ;;  %2526 = vmatprep.mubr.f32.mxu1 %v3333_v42 }
 0x424   :  { %3211 = vmatprep.subr.bf16.mxu1 %v3210_v14 }
 0x42a   :  { %2530 = vmatmul.mubr.f32.vlgmr.msra.gmra.mrb[12].mxu1 %v2276_v53 }
 0x42b   :  { %3213 = vmatpush1.bf16.msra.mxu1 %v3212_v13  ;;  %2612 = vmatprep.mubr.f32.mxu1 %v3333_v42 }
 0x42c   :  { %3215 = vmatprep.subr.bf16.mxu1 %v3194_v32 }
 0x432   :  { %2614 = vmatmul.mubr.f32.vlgmr.msra.gmra.mrb[12].mxu1 %v4274_v57 }
 0x433   :  { %3217 = vmatpush1.bf16.msra.mxu1 %v3196_v5  ;;  %2688 = vmatprep.mubr.f32.mxu1 %v3333_v42 }
 0x43a   :  { %2690 = vmatmul.mubr.f32.vlgmr.msra.gmra.mrb[12].mxu1 %v4274_v57 }
 0x50d   :  { %v2691_v7 = vpop.f32.mrb[12].mxu1 }
 0x50e   :  { %v3234_v19 = vadd.f32 %v2691_v7, %v2201_v10  ;;  %v2693_v56 = vpop.f32.mrb[13].mxu1 }
 0x50f   :  { %v3235_v58 = vadd.f32 %v2693_v56, %v2201_v10 }
 0x511   :  { %v2698_v18 = vcombine.low %v3234_v19, %v3235_v58 }
 0x513   :  { %v2705_v45 = vrot.slane %v2698_v18, %v2704_v31 }
 0x515   :  { %v2712_v16 = vrot.slane %v2705_v45, %v2704_v31 }
 0x517   :  { %2718 = vst.msk [vmem:[#allocation2] sm:$0x3] %vm2716_vm2, %v2712_v16 }
 0x518   :  { %3319 = shalt.err (!%p3316_p4)
}
 0x519   :  { %s3320_s6 = scalar_lea.hbm %s4303_s2, 32 }
 0x51a   :  { %p3321_p5 = scmp.ne.s32.totalorder %s4303_s2, %s3320_s6  ;;  %p3324_p6 = scmp.lt.u32.totalorder %s3320_s6, %s4303_s2 }
 0x51c   :  { %p3326_p7 = pnand %p3324_p6, %p3321_p5 }
 0x51e   :  { %3329 = shalt.err (!%p3326_p7)
}
 0x51f   :  { %2728 = dma.vmem_to_hbm [thread:$0]  %s2726_s30, 32, %s4303_s2, [#allocation3]  }
 0x520   :  { %3330 = dma.done.wait [#allocation3], 32  }
 0x521   :  { %3331 = vsyncadd [#allocation3], 4294967264 }
 0x522   :  { %2732 = vsyncpa [#allocation3], 1 }

</bundles_post_ra>
